<compile_context>
chip_gen: v5e
topology: v5e:2x2
jax: 0.10.0
libtpu: 0.0.40
codegen_flags: <defaults>
</compile_context>

<pallas_src>
import jax
import jax.numpy as jnp
from jax.experimental import pallas as pl
from jax.experimental.pallas import tpu as pltpu


def _gaussian_smearing_kernel(coeff_ref, dist_ref, offset_ref, out_ref):
    # coeff_ref : SMEM (1, 1) scalar (array form so a trainable coeff works)
    # dist_ref  : VMEM (1, T)        -- edge distances, lane-dense
    # offset_ref: VMEM (num_rbf, 1)  -- RBF centers on sublanes
    # out_ref   : VMEM (T, num_rbf)  -- PyTorch-layout output block
    d = dist_ref[...]                          # (1, T)
    off = offset_ref[...]                      # (num_rbf, 1)
    diff = d - off                             # (num_rbf, T) lane-dense, VPU
    arg = coeff_ref[0, 0] * jnp.square(diff)   # f32 VPU
    vals = jnp.exp(arg)                        # f32 EUP
    # Per-tile transpose rides the XLU (vector-extended slot, otherwise idle),
    # so the store is already in PyTorch layout -- no post-kernel XLA transpose.
    out_ref[...] = vals.T.astype(out_ref.dtype)


def _round_up(x, m):
    return ((x + m - 1) // m) * m


def gaussian_smearing(dist, offset, coeff, *, tile_n=8192, out_dtype=jnp.float32):
    """GaussianSmearing forward.

    dist:   (N,)       edge distances
    offset: (num_rbf,) RBF centers
    coeff:  scalar
    Returns (N, num_rbf) = exp(coeff * (dist[:, None] - offset[None, :]) ** 2).
    """
    N = dist.shape[0]
    num_rbf = offset.shape[0]

    if N == 0:
        return jnp.zeros((0, num_rbf), out_dtype)

    dist32 = dist.astype(jnp.float32)
    off_col = offset.reshape(num_rbf, 1).astype(jnp.float32)
    coeff2d = jnp.asarray(coeff, dtype=jnp.float32).reshape(1, 1)

    tile_n = max(128, _round_up(int(tile_n), 128))

    if N <= tile_n:
        # Single grid step: blocks equal the full array dims (no padding, no
        # masking, no 128-alignment requirement on the edge count).
        grid = (1,)
        block_rows = N
        dist_row = dist32.reshape(1, N)
        dist_block = (1, N)
    else:
        # Multi-step grid: edges map to lanes, so the tile is a multiple of 128.
        # The dist input is zero-padded so input reads never go out of bounds;
        # the trailing (partial) OUTPUT block is masked on writeback by Pallas.
        steps = pl.cdiv(N, tile_n)
        grid = (steps,)
        block_rows = tile_n
        n_pad = steps * tile_n
        dist_row = jnp.pad(dist32.reshape(1, N), ((0, 0), (0, n_pad - N)))
        dist_block = (1, tile_n)

    out = pl.pallas_call(
        _gaussian_smearing_kernel,
        out_shape=jax.ShapeDtypeStruct((N, num_rbf), out_dtype),
        grid=grid,
        in_specs=[
            pl.BlockSpec(memory_space=pltpu.SMEM),            # coeff (1, 1) scalar
            pl.BlockSpec(dist_block, lambda i: (0, i)),       # dist tile (lane-dense)
            pl.BlockSpec((num_rbf, 1), lambda i: (0, 0)),     # offsets (tiny, reused)
        ],
        out_specs=pl.BlockSpec((block_rows, num_rbf), lambda i: (i, 0)),
        compiler_params=pltpu.CompilerParams(
            dimension_semantics=("parallel",)),
    )(coeff2d, dist_row, off_col)

    return out


def make_gaussian_smearing_params(cutoff_lower=0.0, cutoff_upper=5.0, num_rbf=50):
    """Deterministic parameter init, matching GaussianSmearing._initial_params."""
    assert num_rbf >= 2, "num_rbf must be >= 2 (coeff uses offset[1] - offset[0])"
    offset = jnp.linspace(cutoff_lower, cutoff_upper, num_rbf, dtype=jnp.float32)
    coeff = -0.5 / (offset[1] - offset[0]) ** 2
    return offset, coeff


if __name__ == "__main__":
    key = jax.random.PRNGKey(0)

    cutoff_lower, cutoff_upper, num_rbf = 0.0, 5.0, 50
    offset, coeff = make_gaussian_smearing_params(cutoff_lower, cutoff_upper, num_rbf)

    def ref_fn(d):
        return jnp.exp(coeff * (d[:, None] - offset[None, :]) ** 2)

    # 1) Small input: single full-array block (no padding, no masking).
    N = 64
    dist = jax.random.uniform(key, (N,), jnp.float32,
                              minval=cutoff_lower, maxval=cutoff_upper)
    out = jax.block_until_ready(gaussian_smearing(dist, offset, coeff))
    assert out.shape == (N, num_rbf)
    assert jnp.allclose(out, ref_fn(dist), atol=1e-5, rtol=1e-5), \
        "mismatch vs reference (N=64)"

    # 2) Multi-step grid with a partial (masked) trailing output block.
    key2 = jax.random.PRNGKey(1)
    N2 = 300
    dist2 = jax.random.uniform(key2, (N2,), jnp.float32,
                               minval=cutoff_lower, maxval=cutoff_upper)
    out2 = jax.block_until_ready(
        gaussian_smearing(dist2, offset, coeff, tile_n=128))
    assert out2.shape == (N2, num_rbf)
    assert jnp.allclose(out2, ref_fn(dist2), atol=1e-5, rtol=1e-5), \
        "mismatch vs reference (N=300, tiled)"

    # 3) Opt-in bf16 output (halves the dominant output HBM traffic).
    key3 = jax.random.PRNGKey(2)
    N3 = 256
    dist3 = jax.random.uniform(key3, (N3,), jnp.float32,
                               minval=cutoff_lower, maxval=cutoff_upper)
    out3 = jax.block_until_ready(
        gaussian_smearing(dist3, offset, coeff, out_dtype=jnp.bfloat16))
    assert out3.shape == (N3, num_rbf) and out3.dtype == jnp.bfloat16
    assert jnp.allclose(out3.astype(jnp.float32), ref_fn(dist3),
                        atol=2e-2, rtol=2e-2), "mismatch vs reference (bf16)"

    print("KERNEL_OK")
</pallas_src>

<mosaic_0001>
module attributes {stable_mosaic.version = 11 : i64} {
  func.func @_gaussian_smearing_kernel(%arg0: i32, %arg1: memref<1x1xf32, #tpu.memory_space<smem>>, %arg2: memref<1x64xf32, #tpu.memory_space<vmem>>, %arg3: memref<50x1xf32, #tpu.memory_space<vmem>>, %arg4: memref<64x50xf32, #tpu.memory_space<vmem>>) attributes {dimension_semantics = [#tpu.dimension_semantics<parallel>], iteration_bounds = array<i64: 1>, scalar_prefetch = 0 : i64, scratch_operands = 0 : i64, tpu.core_type = #tpu.core_type<tc>, window_params = [{transform_indices = @transform_0, window_bounds = array<i64: 1, 1>}, {transform_indices = @transform_1, window_bounds = array<i64: 1, 64>}, {pipeline_mode = #tpu.pipeline_mode<synchronous>, transform_indices = @transform_2, window_bounds = array<i64: 50, 1>}, {transform_indices = @transform_3, window_bounds = array<i64: 64, 50>}]} {
    %c0 = arith.constant 0 : index
    %c0_0 = arith.constant 0 : index
    %0 = vector.load %arg2[%c0, %c0_0] : memref<1x64xf32, #tpu.memory_space<vmem>>, vector<1x64xf32>
    %c0_1 = arith.constant 0 : index
    %c0_2 = arith.constant 0 : index
    %1 = vector.load %arg3[%c0_1, %c0_2] : memref<50x1xf32, #tpu.memory_space<vmem>>, vector<50x1xf32>
    %2 = vector.broadcast %0 : vector<1x64xf32> to vector<50x64xf32>
    %3 = vector.broadcast %1 : vector<50x1xf32> to vector<50x64xf32>
    %4 = arith.subf %2, %3 : vector<50x64xf32>
    %c0_3 = arith.constant 0 : index
    %c0_4 = arith.constant 0 : index
    %5 = memref.load %arg1[%c0_3, %c0_4] : memref<1x1xf32, #tpu.memory_space<smem>>
    %6 = arith.mulf %4, %4 : vector<50x64xf32>
    %7 = vector.broadcast %5 : f32 to vector<50x64xf32>
    %8 = arith.mulf %7, %6 : vector<50x64xf32>
    %9 = math.exp %8 : vector<50x64xf32>
    %10 = tpu.transpose %9, [1, 0] : vector<50x64xf32> -> vector<64x50xf32>
    %c0_5 = arith.constant 0 : index
    %c0_6 = arith.constant 0 : index
    %11 = vector.load %arg4[%c0_5, %c0_6] : memref<64x50xf32, #tpu.memory_space<vmem>>, vector<64x50xf32>
    tpu.vector_store %arg4[%c0_5, %c0_6], %10 {strides = array<i32>} : memref<64x50xf32, #tpu.memory_space<vmem>>, vector<64x50xf32>,
    return
  }
  func.func @transform_0(%arg0: i32) -> (i32, i32) {
    %c0_i32 = arith.constant 0 : i32
    %c0_i32_0 = arith.constant 0 : i32
    %c0_i32_1 = arith.constant 0 : i32
    return %c0_i32, %c0_i32_0 : i32, i32
  }
  func.func @transform_1(%arg0: i32) -> (i32, i32) {
    %c0_i32 = arith.constant 0 : i32
    %c0_i32_0 = arith.constant 0 : i32
    return %c0_i32, %arg0 : i32, i32
  }
  func.func @transform_2(%arg0: i32) -> (i32, i32) {
    %c0_i32 = arith.constant 0 : i32
    %c0_i32_0 = arith.constant 0 : i32
    %c0_i32_1 = arith.constant 0 : i32
    return %c0_i32, %c0_i32_0 : i32, i32
  }
  func.func @transform_3(%arg0: i32) -> (i32, i32) {
    %c0_i32 = arith.constant 0 : i32
    %c0_i32_0 = arith.constant 0 : i32
    return %arg0, %c0_i32 : i32, i32
  }
}

</mosaic_0001>

<bundles_post_ra>
// kernel: tpu_custom_call.1
= control target key start
LH: loop header
LB: loop body
LE: loop exit
PB: predicated region body
PF: predicated region fallthrough
CT: control target
= control target key end

     0   :  { %v163_v0 = vmov 0   ;;  %vm130_vm0 = vcmask 408576   ;;  %s243_s2 = inlined_call_operand.vmem [shape: f32[50,1], index: 2, kind: input, shape index: {}]   ;;  %s244_s1 = inlined_call_operand.vmem [shape: f32[1,64], index: 1, kind: input, shape index: {}]   ;;  %s245_s0 = inlined_call_operand.<no memory space> [shape: f32[1,1], index: 0, kind: input, shape index: {}]   ;;  %s246_s3 = inlined_call_operand.vmem [shape: f32[64,50], index: 3, kind: output, shape index: {}]  }
   0x1   :  { %145 = vset.pattern.permute.xlu0 %v163_v0  ;;  %v16_v1 = vld [vmem:[%s243_s2] sm:$0xff]  ;;  %146 = vset.pattern.permute.xlu1 %v163_v0  ;;  %v18_v2 = vld [vmem:[%s243_s2 + $0x10] sm:$0xff]  ;;  %v17_v4 = vld [vmem:[%s243_s2 + $0x8] sm:$0xff]  ;;  %v76_v11 = vstv %s245_s0 }
   0x2   :  { %28 = vperm.xlu0 %145, %v16_v1   ;;  %38 = vperm.xlu1 %146, %v18_v2   ;;  %v20_v3 = vld [vmem:[%s243_s2 + $0x20] sm:$0xff]  ;;  %v19_v5 = vld [vmem:[%s243_s2 + $0x18] sm:$0xff]  ;;  %v21_v6 = vld [vmem:[%s243_s2 + $0x28] sm:$0xff] }
   0x3   :  { %147 = vset.pattern.permute.xlu2 %v163_v0  ;;  %v22_v7 = vld [vmem:[%s243_s2 + $0x30] sm:$0x3]  ;;  %v148_v8 = vld [vmem:[%s244_s1] ss:$0 sm:$0xff] }
   0x4   :  { %48 = vperm.xlu2 %147, %v20_v3  }
   0xa   :  { %33 = vperm.xlu0 %145, %v17_v4   ;;  %43 = vperm.xlu1 %146, %v19_v5  }
   0xc   :  { %53 = vperm.xlu2 %147, %v21_v6  }
  0x12   :  { %58 = vperm.xlu0 %145, %v22_v7  }
  0x5e   :  { %v49_v28 = vpop.permute.xlu2 %48 }
  0x5f   :  { %v65_v31 = vsub.f32 %v148_v8, %v49_v28 }
  0x61   :  { %v73_v33 = vmul.f32 %v65_v31, %v65_v31 }
  0x63   :  { %v81_v37 = vmul.f32 %v76_v11, %v73_v33 }
  0x65   :  { %v92_v39 = vmul.f32 1.442695, %v81_v37 }
  0x66   :  { %v54_v36 = vpop.permute.xlu2 %53 }
  0x67   :  { %v66_v38 = vsub.f32 %v148_v8, %v54_v36 }
  0x69   :  { %v74_v40 = vmul.f32 %v66_v38, %v66_v38 }
  0x6b   :  { %v82_v44 = vmul.f32 %v76_v11, %v74_v40 }
  0x6d   :  { %v94_v47 = vmul.f32 1.442695, %v82_v44 }
  0x74   :  { %v29_v9 = vpop.permute.xlu0 %28  ;;  %v39_v13 = vpop.permute.xlu1 %38 }
  0x75   :  { %v61_v10 = vsub.f32 %v148_v8, %v29_v9  ;;  %v63_v16 = vsub.f32 %v148_v8, %v39_v13 }
  0x77   :  { %v69_v12 = vmul.f32 %v61_v10, %v61_v10  ;;  %v71_v19 = vmul.f32 %v63_v16, %v63_v16 }
  0x79   :  { %v77_v14 = vmul.f32 %v76_v11, %v69_v12  ;;  %v79_v24 = vmul.f32 %v76_v11, %v71_v19 }
  0x7b   :  { %v84_v15 = vmul.f32 1.442695, %v77_v14  ;;  %v88_v27 = vmul.f32 1.442695, %v79_v24 }
  0x7c   :  { %v34_v17 = vpop.permute.xlu0 %33  ;;  %v44_v22 = vpop.permute.xlu1 %43 }
  0x7d   :  { %149 = vpow2.f32 %v84_v15  ;;  %v62_v18 = vsub.f32 %v148_v8, %v34_v17  ;;  %v64_v26 = vsub.f32 %v148_v8, %v44_v22 }
  0x7f   :  { %v70_v20 = vmul.f32 %v62_v18, %v62_v18  ;;  %v72_v29 = vmul.f32 %v64_v26, %v64_v26 }
  0x81   :  { %v78_v21 = vmul.f32 %v76_v11, %v70_v20  ;;  %v80_v32 = vmul.f32 %v76_v11, %v72_v29 }
  0x83   :  { %v150_v23 = vpop.eup %149  ;;  %v86_v25 = vmul.f32 1.442695, %v78_v21  ;;  %v90_v35 = vmul.f32 1.442695, %v80_v32 }
  0x84   :  { %98 = vxpose.xlu1.b32.start [1/7] (short) (narrow) %v150_v23, 64  ;;  %v59_v41 = vpop.permute.xlu0 %58 }
  0x85   :  { %151 = vpow2.f32 %v86_v25  ;;  %v67_v43 = vsub.f32 %v148_v8, %v59_v41 }
  0x86   :  { %153 = vpow2.f32 %v88_v27 }
  0x87   :  { %155 = vpow2.f32 %v90_v35  ;;  %v75_v46 = vmul.f32 %v67_v43, %v67_v43 }
  0x88   :  { %157 = vpow2.f32 %v92_v39 }
  0x89   :  { %v83_v48 = vmul.f32 %v76_v11, %v75_v46  ;;  %159 = vpow2.f32 %v94_v47 }
  0x8b   :  { %v152_v30 = vpop.eup %151  ;;  %v96_v49 = vmul.f32 1.442695, %v83_v48 }
  0x8c   :  { %99 = vxpose.xlu1.b32.cont [2/7] (short) (narrow) %v152_v30, 64  ;;  %v154_v34 = vpop.eup %153 }
  0x8d   :  { %v156_v42 = vpop.eup %155  ;;  %161 = vpow2.f32 %v96_v49 }
  0x8e   :  { %v158_v45 = vpop.eup %157 }
  0x8f   :  { %v160_v50 = vpop.eup %159 }
  0x93   :  { %v162_v51 = vpop.eup %161 }
  0x94   :  { %100 = vxpose.xlu1.b32.cont [3/7] (short) (narrow) %v154_v34, 64 }
  0x9c   :  { %101 = vxpose.xlu1.b32.cont [4/7] (short) (narrow) %v156_v42, 64 }
  0xa4   :  { %102 = vxpose.xlu1.b32.cont [5/7] (short) (narrow) %v158_v45, 64 }
  0xac   :  { %103 = vxpose.xlu1.b32.cont [6/7] (short) (narrow) %v160_v50, 64 }
  0xb4   :  { %104 = vxpose.xlu1.b32.end [7/7] (short) (narrow) %v162_v51, 64 }
 0x128   :  { %v114_v52 = vpop.trf.xlu1 }
 0x129   :  { %131 = vst.msk [vmem:[%s246_s3] sm:$0xff] %vm130_vm0, %v114_v52 }
 0x130   :  { %v115_v53 = vpop.trf.xlu1 }
 0x131   :  { %132 = vst.msk [vmem:[%s246_s3 + $0x8] sm:$0xff] %vm130_vm0, %v115_v53 }
 0x138   :  { %v116_v54 = vpop.trf.xlu1 }
 0x139   :  { %133 = vst.msk [vmem:[%s246_s3 + $0x10] sm:$0xff] %vm130_vm0, %v116_v54 }
 0x140   :  { %v117_v55 = vpop.trf.xlu1 }
 0x141   :  { %134 = vst.msk [vmem:[%s246_s3 + $0x18] sm:$0xff] %vm130_vm0, %v117_v55 }
 0x148   :  { %v118_v56 = vpop.trf.xlu1 }
 0x149   :  { %135 = vst.msk [vmem:[%s246_s3 + $0x20] sm:$0xff] %vm130_vm0, %v118_v56 }
 0x150   :  { %v119_v57 = vpop.trf.xlu1 }
 0x151   :  { %136 = vst.msk [vmem:[%s246_s3 + $0x28] sm:$0xff] %vm130_vm0, %v119_v57 }
 0x158   :  { %v120_v58 = vpop.trf.xlu1 }
 0x159   :  { %137 = vst.msk [vmem:[%s246_s3 + $0x30] sm:$0xff] %vm130_vm0, %v120_v58 }
 0x160   :  { %v121_v59 = vpop.trf.xlu1 }
 0x161   :  { %138 = vst.msk [vmem:[%s246_s3 + $0x38] sm:$0xff] %vm130_vm0, %v121_v59 }

</bundles_post_ra>
